<compile_context>
chip_gen: v6e
topology: v6e:2x2x1
jax: 0.10.0
libtpu: 0.0.40
codegen_flags: <defaults>
</compile_context>

<pallas_src>
import jax
import jax.numpy as jnp
from jax.experimental import pallas as pl
from jax.experimental.pallas import tpu as pltpu

LN_EPS = 1e-5  # PyTorch nn.LayerNorm default


def _round_up(n, m):
    return ((n + m - 1) // m) * m


def _relu_layernorm(z):
    """ReLU then plain LayerNorm normalization (affine folded into the next
    Linear wrapper-side). Statistics are one-shot (independent reductions) and
    computed in f32."""
    z = jnp.maximum(z, 0.0)
    mu = jnp.mean(z, axis=-1, keepdims=True)
    ms = jnp.mean(z * z, axis=-1, keepdims=True)
    inv = jax.lax.rsqrt(ms - mu * mu + LN_EPS)
    return (z - mu) * inv


def areg10_kernel(x_ref, w1_ref, w2_ref, w3_ref, vec_ref, out_ref):
    cdt = w1_ref.dtype                       # compute dtype for matmul operands

    # Packed vector slab (f32): [b1; b2'; b3'(pad); w4'(pad); b4' @ (4,0)]
    b1 = vec_ref[0:1, :]                     # (1, 64)
    b2 = vec_ref[1:2, :]                     # (1, 64)
    b3 = vec_ref[2:3, 0:32]                  # (1, 32)
    w4 = vec_ref[3:4, 0:32]                  # (1, 32)
    b4 = vec_ref[4:5, 0:1]                   # (1, 1)

    # Layer 1: Linear(20, 64) -> ReLU -> LayerNorm (affine folded forward)
    h = jnp.dot(x_ref[...], w1_ref[...], preferred_element_type=jnp.float32) + b1
    h = _relu_layernorm(h)

    # Layer 2: Linear(64, 64) -> ReLU -> LayerNorm  (Dropout(0.2): identity)
    h = jnp.dot(h.astype(cdt), w2_ref[...], preferred_element_type=jnp.float32) + b2
    h = _relu_layernorm(h)

    # Layer 3: Linear(64, 32) -> ReLU -> LayerNorm  (Dropout(0.1): identity)
    h = jnp.dot(h.astype(cdt), w3_ref[...], preferred_element_type=jnp.float32) + b3
    h = _relu_layernorm(h)                   # (TM, 32) f32

    # Logits Linear(32, 1): VPU multiply + lane reduce (skips an N=1 MXU
    # matmul); lane-dense (1, TM) store with batch on the lane axis.
    y = jnp.sum(h * w4, axis=-1)             # (TM,)
    out_ref[...] = (y[None, :] + b4).astype(out_ref.dtype)


def _choose_tile(batch, tm_req):
    """Pick (tile_rows, padded_batch). Small batches: one 16-rounded tile.
    Larger batches: tile multiple of 128 (lane-dense output block) and at
    least 2 grid steps so both v7x TensorCores get work."""
    b16 = _round_up(max(batch, 1), 16)
    if b16 <= 128:
        return b16, b16
    tm_cap = max(128, _round_up(tm_req, 128))
    two_way = _round_up(-(-b16 // 2), 128)
    tm = max(128, min(tm_cap, two_way))
    bp = _round_up(b16, tm)
    return tm, bp


def areg10_forward(x, params, *, tm=2048, compute_dtype=jnp.bfloat16):
    """Fused forward pass. x: [B, 20] float; returns [B, 1] float32.

    tm: requested batch-tile rows per grid step.
    compute_dtype: dtype of the streamed input / matmul operands / stored
        intermediates (bf16 default; LayerNorm math and bias adds stay f32).
    """
    B, F = x.shape
    tm, Bp = _choose_tile(B, tm)
    n_tiles = Bp // tm
    if Bp != B:
        x = jnp.pad(x, ((0, Bp - B), (0, 0)))

    # ---- Fold each LayerNorm's affine into the following Linear (f32 math).
    w1 = params["w1"]
    b1 = params["b1"]
    w2 = params["g1"][:, None] * params["w2"]
    b2 = params["be1"] @ params["w2"] + params["b2"]
    w3 = params["g2"][:, None] * params["w3"]
    b3 = params["be2"] @ params["w3"] + params["b3"]
    w4 = params["g3"] * params["w4"][:, 0]                 # (32,)
    b4 = params["be3"] @ params["w4"][:, 0] + params["b4"][0]

    # ---- Pack the five small vectors into one (8, 64) f32 slab.
    vecs = jnp.zeros((8, 64), jnp.float32)
    vecs = vecs.at[0, :].set(b1.astype(jnp.float32))
    vecs = vecs.at[1, :].set(b2.astype(jnp.float32))
    vecs = vecs.at[2, :32].set(b3.astype(jnp.float32))
    vecs = vecs.at[3, :32].set(w4.astype(jnp.float32))
    vecs = vecs.at[4, 0].set(b4.astype(jnp.float32))

    # ---- Cast streamed input + matmul weights to the compute dtype.
    x = x.astype(compute_dtype)
    w1 = w1.astype(compute_dtype)
    w2 = w2.astype(compute_dtype)
    w3 = w3.astype(compute_dtype)

    in_specs = [
        pl.BlockSpec((tm, F), lambda i: (i, 0)),           # x: tiled over batch
        pl.BlockSpec(w1.shape, lambda i: (0, 0)),          # VMEM-resident params
        pl.BlockSpec(w2.shape, lambda i: (0, 0)),
        pl.BlockSpec(w3.shape, lambda i: (0, 0)),
        pl.BlockSpec(vecs.shape, lambda i: (0, 0)),
    ]
    out_spec = pl.BlockSpec((1, tm), lambda i: (0, i))     # lane-dense output

    out = pl.pallas_call(
        areg10_kernel,
        grid=(n_tiles,),
        in_specs=in_specs,
        out_specs=out_spec,
        out_shape=jax.ShapeDtypeStruct((1, Bp), jnp.float32),
        compiler_params=pltpu.CompilerParams(
            dimension_semantics=("parallel",),
            vmem_limit_bytes=32 * 1024 * 1024,
        ),
    )(x, w1, w2, w3, vecs)

    return out.reshape(Bp)[:B].reshape(B, 1)


def init_params(key):
    """Deterministic init mirroring the PyTorch module's parameter shapes.
    Linear weights stored transposed as [in, out]; LayerNorm gamma/beta are
    perturbed away from ones/zeros so the affine-fold path is exercised."""
    dims = [(20, 64), (64, 64), (64, 32), (32, 1)]
    keys = jax.random.split(key, 14)
    p = {}
    for i, (fin, fout) in enumerate(dims, start=1):
        bound = float(fin) ** -0.5
        p[f"w{i}"] = jax.random.uniform(
            keys[2 * (i - 1)], (fin, fout), jnp.float32, -bound, bound)
        p[f"b{i}"] = jax.random.uniform(
            keys[2 * (i - 1) + 1], (fout,), jnp.float32, -bound, bound)
    for j, d in zip((1, 2, 3), (64, 64, 32)):
        p[f"g{j}"] = 1.0 + 0.01 * jax.random.normal(keys[7 + j], (d,), jnp.float32)
        p[f"be{j}"] = 0.01 * jax.random.normal(keys[10 + j], (d,), jnp.float32)
    return p


def _layernorm_ref(h, g, b):
    # Two-pass variance, matching PyTorch nn.LayerNorm semantics.
    mu = jnp.mean(h, axis=-1, keepdims=True)
    var = jnp.mean((h - mu) ** 2, axis=-1, keepdims=True)
    return (h - mu) / jnp.sqrt(var + LN_EPS) * g + b


def areg10_reference(x, p):
    """Pure-JAX (unfolded, f32) reference for correctness checking."""
    h = _layernorm_ref(jnp.maximum(x @ p["w1"] + p["b1"], 0.0), p["g1"], p["be1"])
    h = _layernorm_ref(jnp.maximum(h @ p["w2"] + p["b2"], 0.0), p["g2"], p["be2"])
    h = _layernorm_ref(jnp.maximum(h @ p["w3"] + p["b3"], 0.0), p["g3"], p["be3"])
    return h @ p["w4"] + p["b4"]


if __name__ == "__main__":
    key = jax.random.PRNGKey(0)
    k_x, k_p = jax.random.split(key)
    params = init_params(k_p)

    # Small batch, single tile. MinMaxScaler output is in [0, 1].
    B = 8
    x = jax.random.uniform(k_x, (B, 20), jnp.float32, 0.0, 1.0)
    ref = areg10_reference(x, params)

    # f32 compute path: tight check of the LN-affine fold + kernel structure.
    out_f32 = jax.block_until_ready(
        areg10_forward(x, params, compute_dtype=jnp.float32))
    assert out_f32.shape == (B, 1), out_f32.shape
    assert jnp.allclose(out_f32, ref, atol=1e-4, rtol=1e-4), (
        f"f32 max abs err {jnp.max(jnp.abs(out_f32 - ref))}")

    # Default bf16 compute path (looser tolerance vs the f32 reference).
    out_bf16 = jax.block_until_ready(areg10_forward(x, params))
    assert out_bf16.shape == (B, 1), out_bf16.shape
    assert jnp.allclose(out_bf16, ref, atol=5e-2, rtol=5e-2), (
        f"bf16 max abs err {jnp.max(jnp.abs(out_bf16 - ref))}")

    # Multi-tile path (>=2 grid steps: exercises padding + the parallel axis).
    B2 = 300
    x2 = jax.random.uniform(jax.random.PRNGKey(1), (B2, 20), jnp.float32, 0.0, 1.0)
    out2 = jax.block_until_ready(areg10_forward(x2, params, tm=128))
    ref2 = areg10_reference(x2, params)
    assert out2.shape == (B2, 1), out2.shape
    assert jnp.allclose(out2, ref2, atol=5e-2, rtol=5e-2), (
        f"bf16 multi-tile max abs err {jnp.max(jnp.abs(out2 - ref2))}")

    # TODO(synk): sklearn MinMaxScaler preprocessing is host-side and outside
    # the module's forward; Dropout layers are eval-mode identities here.
    print("KERNEL_OK")
</pallas_src>

<mosaic_0001>
module attributes {stable_mosaic.version = 11 : i64} {
  func.func @areg10_kernel(%arg0: i32, %arg1: memref<16x20xf32, #tpu.memory_space<vmem>>, %arg2: memref<20x64xf32, #tpu.memory_space<vmem>>, %arg3: memref<64x64xf32, #tpu.memory_space<vmem>>, %arg4: memref<64x32xf32, #tpu.memory_space<vmem>>, %arg5: memref<8x64xf32, #tpu.memory_space<vmem>>, %arg6: memref<1x16xf32, #tpu.memory_space<vmem>>) attributes {dimension_semantics = [#tpu.dimension_semantics<parallel>], iteration_bounds = array<i64: 1>, scalar_prefetch = 0 : i64, scratch_operands = 0 : i64, tpu.core_type = #tpu.core_type<tc>, window_params = [{transform_indices = @transform_0, window_bounds = array<i64: 16, 20>}, {pipeline_mode = #tpu.pipeline_mode<synchronous>, transform_indices = @transform_1, window_bounds = array<i64: 20, 64>}, {pipeline_mode = #tpu.pipeline_mode<synchronous>, transform_indices = @transform_2, window_bounds = array<i64: 64, 64>}, {pipeline_mode = #tpu.pipeline_mode<synchronous>, transform_indices = @transform_3, window_bounds = array<i64: 64, 32>}, {pipeline_mode = #tpu.pipeline_mode<synchronous>, transform_indices = @transform_4, window_bounds = array<i64: 8, 64>}, {transform_indices = @transform_5, window_bounds = array<i64: 1, 16>}]} {
    %c0 = arith.constant 0 : index
    %c0_0 = arith.constant 0 : index
    %0 = vector.load %arg5[%c0, %c0_0] : memref<8x64xf32, #tpu.memory_space<vmem>>, vector<1x64xf32>
    %c1 = arith.constant 1 : index
    %c0_1 = arith.constant 0 : index
    %1 = vector.load %arg5[%c1, %c0_1] : memref<8x64xf32, #tpu.memory_space<vmem>>, vector<1x64xf32>
    %c2 = arith.constant 2 : index
    %c0_2 = arith.constant 0 : index
    %2 = vector.load %arg5[%c2, %c0_2] : memref<8x64xf32, #tpu.memory_space<vmem>>, vector<1x32xf32>
    %c3 = arith.constant 3 : index
    %c0_3 = arith.constant 0 : index
    %3 = vector.load %arg5[%c3, %c0_3] : memref<8x64xf32, #tpu.memory_space<vmem>>, vector<1x32xf32>
    %c4 = arith.constant 4 : index
    %c0_4 = arith.constant 0 : index
    %4 = vector.load %arg5[%c4, %c0_4] : memref<8x64xf32, #tpu.memory_space<vmem>>, vector<1x1xf32>
    %c0_5 = arith.constant 0 : index
    %c0_6 = arith.constant 0 : index
    %5 = vector.load %arg1[%c0_5, %c0_6] : memref<16x20xf32, #tpu.memory_space<vmem>>, vector<16x20xf32>
    %c0_7 = arith.constant 0 : index
    %c0_8 = arith.constant 0 : index
    %6 = vector.load %arg2[%c0_7, %c0_8] : memref<20x64xf32, #tpu.memory_space<vmem>>, vector<20x64xf32>
    %cst = arith.constant dense<0.000000e+00> : vector<16x64xf32>
    %7 = tpu.matmul %5, %6, %cst {dimension_numbers = #tpu.dot_dimension_numbers<[1], [0], [0], [1], [0, 0, 1, 1], [], []>} : vector<16x20xf32>, vector<20x64xf32>, vector<16x64xf32> -> vector<16x64xf32>
    %8 = vector.broadcast %0 : vector<1x64xf32> to vector<16x64xf32>
    %9 = arith.addf %7, %8 : vector<16x64xf32>
    %cst_9 = arith.constant 0.000000e+00 : f32
    %10 = vector.broadcast %cst_9 : f32 to vector<16x64xf32>
    %11 = arith.maximumf %9, %10 : vector<16x64xf32>
    %cst_10 = arith.constant dense<0.000000e+00> : vector<16xf32>
    %12 = vector.multi_reduction <add>, %11, %cst_10 [1] : vector<16x64xf32> to vector<16xf32>
    %13 = vector.shape_cast %12 : vector<16xf32> to vector<16x1xf32>
    %cst_11 = arith.constant 6.400000e+01 : f32
    %14 = vector.broadcast %cst_11 : f32 to vector<16x1xf32>
    %15 = arith.divf %13, %14 : vector<16x1xf32>
    %16 = arith.mulf %11, %11 : vector<16x64xf32>
    %cst_12 = arith.constant dense<0.000000e+00> : vector<16xf32>
    %17 = vector.multi_reduction <add>, %16, %cst_12 [1] : vector<16x64xf32> to vector<16xf32>
    %18 = vector.shape_cast %17 : vector<16xf32> to vector<16x1xf32>
    %cst_13 = arith.constant 6.400000e+01 : f32
    %19 = vector.broadcast %cst_13 : f32 to vector<16x1xf32>
    %20 = arith.divf %18, %19 : vector<16x1xf32>
    %21 = arith.mulf %15, %15 : vector<16x1xf32>
    %22 = arith.subf %20, %21 : vector<16x1xf32>
    %cst_14 = arith.constant 9.99999974E-6 : f32
    %23 = vector.broadcast %cst_14 : f32 to vector<16x1xf32>
    %24 = arith.addf %22, %23 : vector<16x1xf32>
    %25 = math.rsqrt %24 : vector<16x1xf32>
    %26 = vector.broadcast %15 : vector<16x1xf32> to vector<16x64xf32>
    %27 = arith.subf %11, %26 : vector<16x64xf32>
    %28 = vector.broadcast %25 : vector<16x1xf32> to vector<16x64xf32>
    %29 = arith.mulf %27, %28 : vector<16x64xf32>
    %c0_15 = arith.constant 0 : index
    %c0_16 = arith.constant 0 : index
    %30 = vector.load %arg3[%c0_15, %c0_16] : memref<64x64xf32, #tpu.memory_space<vmem>>, vector<64x64xf32>
    %cst_17 = arith.constant dense<0.000000e+00> : vector<16x64xf32>
    %31 = tpu.matmul %29, %30, %cst_17 {dimension_numbers = #tpu.dot_dimension_numbers<[1], [0], [0], [1], [0, 0, 1, 1], [], []>} : vector<16x64xf32>, vector<64x64xf32>, vector<16x64xf32> -> vector<16x64xf32>
    %32 = vector.broadcast %1 : vector<1x64xf32> to vector<16x64xf32>
    %33 = arith.addf %31, %32 : vector<16x64xf32>
    %cst_18 = arith.constant 0.000000e+00 : f32
    %34 = vector.broadcast %cst_18 : f32 to vector<16x64xf32>
    %35 = arith.maximumf %33, %34 : vector<16x64xf32>
    %cst_19 = arith.constant dense<0.000000e+00> : vector<16xf32>
    %36 = vector.multi_reduction <add>, %35, %cst_19 [1] : vector<16x64xf32> to vector<16xf32>
    %37 = vector.shape_cast %36 : vector<16xf32> to vector<16x1xf32>
    %cst_20 = arith.constant 6.400000e+01 : f32
    %38 = vector.broadcast %cst_20 : f32 to vector<16x1xf32>
    %39 = arith.divf %37, %38 : vector<16x1xf32>
    %40 = arith.mulf %35, %35 : vector<16x64xf32>
    %cst_21 = arith.constant dense<0.000000e+00> : vector<16xf32>
    %41 = vector.multi_reduction <add>, %40, %cst_21 [1] : vector<16x64xf32> to vector<16xf32>
    %42 = vector.shape_cast %41 : vector<16xf32> to vector<16x1xf32>
    %cst_22 = arith.constant 6.400000e+01 : f32
    %43 = vector.broadcast %cst_22 : f32 to vector<16x1xf32>
    %44 = arith.divf %42, %43 : vector<16x1xf32>
    %45 = arith.mulf %39, %39 : vector<16x1xf32>
    %46 = arith.subf %44, %45 : vector<16x1xf32>
    %cst_23 = arith.constant 9.99999974E-6 : f32
    %47 = vector.broadcast %cst_23 : f32 to vector<16x1xf32>
    %48 = arith.addf %46, %47 : vector<16x1xf32>
    %49 = math.rsqrt %48 : vector<16x1xf32>
    %50 = vector.broadcast %39 : vector<16x1xf32> to vector<16x64xf32>
    %51 = arith.subf %35, %50 : vector<16x64xf32>
    %52 = vector.broadcast %49 : vector<16x1xf32> to vector<16x64xf32>
    %53 = arith.mulf %51, %52 : vector<16x64xf32>
    %c0_24 = arith.constant 0 : index
    %c0_25 = arith.constant 0 : index
    %54 = vector.load %arg4[%c0_24, %c0_25] : memref<64x32xf32, #tpu.memory_space<vmem>>, vector<64x32xf32>
    %cst_26 = arith.constant dense<0.000000e+00> : vector<16x32xf32>
    %55 = tpu.matmul %53, %54, %cst_26 {dimension_numbers = #tpu.dot_dimension_numbers<[1], [0], [0], [1], [0, 0, 1, 1], [], []>} : vector<16x64xf32>, vector<64x32xf32>, vector<16x32xf32> -> vector<16x32xf32>
    %56 = vector.broadcast %2 : vector<1x32xf32> to vector<16x32xf32>
    %57 = arith.addf %55, %56 : vector<16x32xf32>
    %cst_27 = arith.constant 0.000000e+00 : f32
    %58 = vector.broadcast %cst_27 : f32 to vector<16x32xf32>
    %59 = arith.maximumf %57, %58 : vector<16x32xf32>
    %cst_28 = arith.constant dense<0.000000e+00> : vector<16xf32>
    %60 = vector.multi_reduction <add>, %59, %cst_28 [1] : vector<16x32xf32> to vector<16xf32>
    %61 = vector.shape_cast %60 : vector<16xf32> to vector<16x1xf32>
    %cst_29 = arith.constant 3.200000e+01 : f32
    %62 = vector.broadcast %cst_29 : f32 to vector<16x1xf32>
    %63 = arith.divf %61, %62 : vector<16x1xf32>
    %64 = arith.mulf %59, %59 : vector<16x32xf32>
    %cst_30 = arith.constant dense<0.000000e+00> : vector<16xf32>
    %65 = vector.multi_reduction <add>, %64, %cst_30 [1] : vector<16x32xf32> to vector<16xf32>
    %66 = vector.shape_cast %65 : vector<16xf32> to vector<16x1xf32>
    %cst_31 = arith.constant 3.200000e+01 : f32
    %67 = vector.broadcast %cst_31 : f32 to vector<16x1xf32>
    %68 = arith.divf %66, %67 : vector<16x1xf32>
    %69 = arith.mulf %63, %63 : vector<16x1xf32>
    %70 = arith.subf %68, %69 : vector<16x1xf32>
    %cst_32 = arith.constant 9.99999974E-6 : f32
    %71 = vector.broadcast %cst_32 : f32 to vector<16x1xf32>
    %72 = arith.addf %70, %71 : vector<16x1xf32>
    %73 = math.rsqrt %72 : vector<16x1xf32>
    %74 = vector.broadcast %63 : vector<16x1xf32> to vector<16x32xf32>
    %75 = arith.subf %59, %74 : vector<16x32xf32>
    %76 = vector.broadcast %73 : vector<16x1xf32> to vector<16x32xf32>
    %77 = arith.mulf %75, %76 : vector<16x32xf32>
    %78 = vector.broadcast %3 : vector<1x32xf32> to vector<16x32xf32>
    %79 = arith.mulf %77, %78 : vector<16x32xf32>
    %cst_33 = arith.constant dense<0.000000e+00> : vector<16xf32>
    %80 = vector.multi_reduction <add>, %79, %cst_33 [1] : vector<16x32xf32> to vector<16xf32>
    %81 = vector.shape_cast %80 : vector<16xf32> to vector<1x16xf32>
    %82 = vector.broadcast %4 : vector<1x1xf32> to vector<1x16xf32>
    %83 = arith.addf %81, %82 : vector<1x16xf32>
    %c0_34 = arith.constant 0 : index
    %c0_35 = arith.constant 0 : index
    %84 = vector.load %arg6[%c0_34, %c0_35] : memref<1x16xf32, #tpu.memory_space<vmem>>, vector<1x16xf32>
    tpu.vector_store %arg6[%c0_34, %c0_35], %83 {strides = array<i32>} : memref<1x16xf32, #tpu.memory_space<vmem>>, vector<1x16xf32>,
    return
  }
  func.func @transform_0(%arg0: i32) -> (i32, i32) {
    %c0_i32 = arith.constant 0 : i32
    %c0_i32_0 = arith.constant 0 : i32
    return %arg0, %c0_i32 : i32, i32
  }
  func.func @transform_1(%arg0: i32) -> (i32, i32) {
    %c0_i32 = arith.constant 0 : i32
    %c0_i32_0 = arith.constant 0 : i32
    %c0_i32_1 = arith.constant 0 : i32
    return %c0_i32, %c0_i32_0 : i32, i32
  }
  func.func @transform_2(%arg0: i32) -> (i32, i32) {
    %c0_i32 = arith.constant 0 : i32
    %c0_i32_0 = arith.constant 0 : i32
    %c0_i32_1 = arith.constant 0 : i32
    return %c0_i32, %c0_i32_0 : i32, i32
  }
  func.func @transform_3(%arg0: i32) -> (i32, i32) {
    %c0_i32 = arith.constant 0 : i32
    %c0_i32_0 = arith.constant 0 : i32
    %c0_i32_1 = arith.constant 0 : i32
    return %c0_i32, %c0_i32_0 : i32, i32
  }
  func.func @transform_4(%arg0: i32) -> (i32, i32) {
    %c0_i32 = arith.constant 0 : i32
    %c0_i32_0 = arith.constant 0 : i32
    %c0_i32_1 = arith.constant 0 : i32
    return %c0_i32, %c0_i32_0 : i32, i32
  }
  func.func @transform_5(%arg0: i32) -> (i32, i32) {
    %c0_i32 = arith.constant 0 : i32
    %c0_i32_0 = arith.constant 0 : i32
    return %c0_i32, %arg0 : i32, i32
  }
}

</mosaic_0001>

<bundles_post_ra>
// kernel: tpu_custom_call.1
= control target key start
LH: loop header
LB: loop body
LE: loop exit
PB: predicated region body
PF: predicated region fallthrough
CT: control target
= control target key end

     0   :  { %10 = vsyncpa [#allocation3], 0  ;;  %s760_s0 = inlined_call_operand.hbm [shape: f32[16,20], index: 0, kind: input, shape index: {}]   ;;  %s761_s1 = inlined_call_operand.vmem [shape: f32[20,64], index: 1, kind: input, shape index: {}]   ;;  %s762_s2 = inlined_call_operand.vmem [shape: f32[64,64], index: 2, kind: input, shape index: {}]   ;;  %s763_s3 = inlined_call_operand.vmem [shape: f32[64,32], index: 3, kind: input, shape index: {}]   ;;  %s764_s4 = inlined_call_operand.vmem [shape: f32[8,64], index: 4, kind: input, shape index: {}]   ;;  %s765_s5 = inlined_call_operand.hbm [shape: f32[1,16], index: 5, kind: output, shape index: {}]  }
   0x1   :  { %11 = vsyncpa [#allocation4], 0  ;;  %s629_s18 = smov [#allocation2]  }
   0x2   :  { %s17_s19 = sshll.u32 %s629_s18, 4  ;;  %s18_s19 = int_to_ptr.vmem [resolvable:$true] %s17_s19 }
   0x3   :  { %s593_s20 = scalar_lea.vmem %s18_s19, 256  ;;  %p598_p1 = scmp.lt.s32.totalorder %s18_s19, %s18_s19 }
   0x4   :  { %p594_p0 = scmp.ne.s32.totalorder %s18_s19, %s593_s20  ;;  %p599_p2 = scmp.lt.s32.totalorder %s593_s20, %s593_s20 }
   0x6   :  { %p600_p3 = por %p599_p2, %p598_p1 }
   0x8   :  { %p601_p4 = pnand %p600_p3, %p594_p0 }
   0xa   :  { %604 = shalt.err (!%p601_p4)
}
   0xb   :  { %s630_s21 = smov 128   ;;  %s631_s22 = smov 8  }
   0xc   :  { %23 = dma.hbm_to_vmem [thread:$0]  %s760_s0, 256, %s18_s19, [#allocation3], %s630_s21, %s630_s21, %s631_s22  }
   0xd   :  { %625 = dma.done.wait [#allocation3], 256  }
   0xe   :  { %626 = vsyncadd [#allocation3], 4294967040  ;;  %vm56_vm0 = vcmask 1043456   ;;  %vm49_vm1 = vcmask 162816   ;;  %v44_v0 = vld [vmem:[%s761_s1 + $0x10] sm:$0xf] }
   0xf   :  { %v43_v1 = vld [vmem:[%s761_s1 + $0x8] sm:$0xff]  ;;  %519 = vmatprep.subr.msk.mxu0 %vm56_vm0, %v44_v0  ;;  %v40_v2 = vld [vmem:[#allocation2] sm:$0xff]  ;;  %vm137_vm2 = vcmask 523264   ;;  %v176_v18 = vld [vmem:[%s762_s2 + $0x38] sm:$0xff]  ;;  %vm389_vm3 = vcmask 261120   ;;  %s633_s17 = smov [#allocation5]  }
  0x10   :  { %520 = vmatpush3.msk.msra.mxu0 %vm56_vm0, %v44_v0  ;;  %v42_v3 = vld [vmem:[%s761_s1] sm:$0xff]  ;;  %525 = vmatprep.mubr.msk.f32.mxu0 %vm49_vm1, %v40_v2  ;;  %v41_v4 = vld [vmem:[#allocation2 + $0x8] sm:$0xff]  ;;  %v175_v19 = vld [vmem:[%s762_s2 + $0x30] sm:$0xff]  ;;  %s474_s18 = sshll.u32 %s633_s17, 4  ;;  %vm463_vm4 = vcmask 130112   ;;  %vm466_vm5 = vcmask 122880   ;;  %s475_s18 = int_to_ptr.vmem [resolvable:$true] %s474_s18 }
  0x11   :  { %521 = vmatprep.subr.mxu0 %v43_v1  ;;  %v483_v5 = vld [vmem:[%s764_s4] ss:$0 sm:$0xff]  ;;  %528 = vmatprep.subr.mxu1 %v176_v18  ;;  %v174_v20 = vld [vmem:[%s762_s2 + $0x28] sm:$0xff]  ;;  %v172_v22 = vld [vmem:[%s762_s2 + $0x18] sm:$0xff]  ;;  %s609_s19 = scalar_lea.vmem %s475_s18, 32  ;;  %p610_p6 = scmp.lt.s32.totalorder %s475_s18, %s475_s18 }
  0x12   :  { %522 = vmatpush3.msra.mxu0 %v43_v1  ;;  %529 = vmatpush3.msra.mxu1 %v176_v18  ;;  %v173_v21 = vld [vmem:[%s762_s2 + $0x20] sm:$0xff]  ;;  %v171_v23 = vld [vmem:[%s762_s2 + $0x10] sm:$0xff]  ;;  %v170_v24 = vld [vmem:[%s762_s2 + $0x8] sm:$0xff] }
  0x13   :  { %523 = vmatprep.subr.mxu0 %v42_v3  ;;  %530 = vmatprep.subr.mxu1 %v175_v19  ;;  %v169_v25 = vld [vmem:[%s762_s2] sm:$0xff]  ;;  %v301_v59 = vld [vmem:[%s763_s3 + $0x38] sm:$0xff]  ;;  %v300_v60 = vld [vmem:[%s763_s3 + $0x30] sm:$0xff] }
  0x14   :  { %524 = vmatpush3.msra.mxu0 %v42_v3  ;;  %531 = vmatpush3.msra.mxu1 %v175_v19  ;;  %v487_v46 = vld [vmem:[%s764_s4 + $0x1] ss:$0 sm:$0xff]  ;;  %v299_v61 = vld [vmem:[%s763_s3 + $0x28] sm:$0xff]  ;;  %v297_v63 = vld [vmem:[%s763_s3 + $0x18] sm:$0xff] }
  0x15   :  { %526 = vmatmul.mubr.msk.f32.vlgmr.msra.gmra.mxu0 %vm49_vm1, %v41_v4  ;;  %532 = vmatprep.subr.mxu1 %v174_v20  ;;  %v298_v62 = vld [vmem:[%s763_s3 + $0x20] sm:$0xff]  ;;  %v296_v0 = vld [vmem:[%s763_s3 + $0x10] sm:$0xff]  ;;  %v295_v1 = vld [vmem:[%s763_s3 + $0x8] sm:$0xff] }
  0x16   :  { %533 = vmatpush3.msra.mxu1 %v174_v20  ;;  %547 = vmatprep.subr.mxu0 %v301_v59  ;;  %v294_v2 = vld [vmem:[%s763_s3] sm:$0xff] }
  0x17   :  { %534 = vmatprep.subr.mxu1 %v173_v21  ;;  %548 = vmatpush3.msra.mxu0 %v301_v59 }
  0x18   :  { %535 = vmatpush3.msra.mxu1 %v173_v21  ;;  %549 = vmatprep.subr.mxu0 %v300_v60 }
  0x19   :  { %536 = vmatprep.subr.mxu1 %v172_v22  ;;  %550 = vmatpush3.msra.mxu0 %v300_v60 }
  0x1a   :  { %537 = vmatpush3.msra.mxu1 %v172_v22  ;;  %551 = vmatprep.subr.mxu0 %v299_v61 }
  0x1b   :  { %538 = vmatprep.subr.mxu1 %v171_v23  ;;  %552 = vmatpush3.msra.mxu0 %v299_v61 }
  0x1c   :  { %539 = vmatpush3.msra.mxu1 %v171_v23  ;;  %553 = vmatprep.subr.mxu0 %v298_v62  ;;  %v490_v23 = vld [vmem:[%s764_s4 + $0x2] ss:$0 sm:$0xff] }
  0x1d   :  { %540 = vmatprep.subr.mxu1 %v170_v24  ;;  %554 = vmatpush3.msra.mxu0 %v298_v62  ;;  %v39_v62 = vld [vmem:[%s764_s4 + $0x4] sm:$0x1] }
  0x1e   :  { %541 = vmatpush3.msra.mxu1 %v170_v24  ;;  %555 = vmatprep.subr.mxu0 %v297_v63 }
  0x1f   :  { %542 = vmatprep.subr.mxu1 %v169_v25  ;;  %556 = vmatpush3.msra.mxu0 %v297_v63  ;;  %v437_v63 = vlaneseq }
  0x20   :  { %543 = vmatpush3.msra.mxu1 %v169_v25  ;;  %557 = vmatprep.subr.mxu0 %v296_v0 }
  0x21   :  { %558 = vmatpush3.msra.mxu0 %v296_v0  ;;  %v438_v0 = vshrl.u32 %v437_v63, 7 }
  0x22   :  { %559 = vmatprep.subr.mxu0 %v295_v1 }
  0x23   :  { %560 = vmatpush3.msra.mxu0 %v295_v1 }
  0x24   :  { %561 = vmatprep.subr.mxu0 %v294_v2 }
  0x25   :  { %562 = vmatpush3.msra.mxu0 %v294_v2  ;;  %v439_v2 = vsub.s32 0, %v438_v0 }
  0xd5   :  { %v527_v6 = vpop.f32.mrf.mxu0 }
  0xd6   :  { %v132_v7 = vadd.f32 %v527_v6, %v483_v5 }
  0xd7   :  { %v126_v8 = vpop.f32.mrf.mxu0 }
  0xd8   :  { %v127_v9 = vadd.f32 %v483_v5, %v126_v8  ;;  %v136_v10 = vmax.f32 %v132_v7, 0.0 }
  0xda   :  { %v135_v11 = vmax.f32 %v127_v9, 0.0  ;;  %v148_v15 = vmul.f32 %v136_v10, %v136_v10  ;;  %v141_v16 = vsel %vm137_vm2, %v136_v10, 0.0 }
  0xdc   :  { %v138_v12 = vsel %vm137_vm2, %v135_v11, 0.0  ;;  %v147_v13 = vmul.f32 %v135_v11, %v135_v11  ;;  %v152_v17 = vsel %vm137_vm2, %v148_v15, 0.0 }
  0xdd   :  { %139 = vadd.xlane.f32.xlu0 %v138_v12 }
  0xde   :  { %v149_v14 = vsel %vm137_vm2, %v147_v13, 0.0 }
  0xdf   :  { %150 = vadd.xlane.f32.xlu1 %v149_v14 }
  0xe1   :  { %142 = vadd.xlane.f32.xlu0 %v141_v16 }
  0xe3   :  { %153 = vadd.xlane.f32.xlu1 %v152_v17 }
 0x166   :  { %v140_v26 = vpop.xlane.xlu0 %139 }
 0x167   :  { %v145_v27 = vmul.f32 0.015625, %v140_v26 }
 0x168   :  { %v151_v28 = vpop.xlane.xlu1 %150 }
 0x169   :  { %v157_v29 = vmul.f32 %v145_v27, %v145_v27  ;;  %v155_v30 = vmul.f32 0.015625, %v151_v28  ;;  %v165_v40 = vsub.f32 %v135_v11, %v145_v27 }
 0x16a   :  { %v143_v31 = vpop.xlane.xlu0 %142 }
 0x16b   :  { %v159_v32 = vsub.f32 %v155_v30, %v157_v29  ;;  %v146_v33 = vmul.f32 0.015625, %v143_v31 }
 0x16c   :  { %v154_v34 = vpop.xlane.xlu1 %153 }
 0x16d   :  { %v161_v35 = vadd.f32 1e-05, %v159_v32  ;;  %v158_v36 = vmul.f32 %v146_v33, %v146_v33  ;;  %v156_v37 = vmul.f32 0.015625, %v154_v34  ;;  %v166_v43 = vsub.f32 %v136_v10, %v146_v33 }
 0x16f   :  { %573 = vrsqrt.f32 %v161_v35  ;;  %v160_v38 = vsub.f32 %v156_v37, %v158_v36  ;;  %v632_v36 = vmov 0  }
 0x170   :  { %571 = vset.pattern.permute.xlu0 %v632_v36  ;;  %572 = vset.pattern.permute.xlu1 %v632_v36 }
 0x171   :  { %v162_v39 = vadd.f32 1e-05, %v160_v38 }
 0x173   :  { %575 = vrsqrt.f32 %v162_v39 }
 0x17c   :  { %v574_v41 = vpop.eup %573 }
 0x17d   :  { %v167_v42 = vmul.f32 %v574_v41, %v165_v40 }
 0x17f   :  { %544 = vmatprep.mubr.msk.f32.mxu1 %vm137_vm2, %v167_v42 }
 0x180   :  { %v576_v44 = vpop.eup %575 }
 0x181   :  { %v168_v45 = vmul.f32 %v576_v44, %v166_v43 }
 0x183   :  { %545 = vmatmul.mubr.msk.f32.vlgmr.msra.gmra.mxu1 %vm137_vm2, %v168_v45 }
 0x243   :  { %v546_v47 = vpop.f32.mrf.mxu1 }
 0x244   :  { %v259_v48 = vadd.f32 %v546_v47, %v487_v46 }
 0x245   :  { %v253_v49 = vpop.f32.mrf.mxu1 }
 0x246   :  { %v263_v50 = vmax.f32 %v259_v48, 0.0  ;;  %v254_v51 = vadd.f32 %v487_v46, %v253_v49 }
 0x248   :  { %v262_v52 = vmax.f32 %v254_v51, 0.0  ;;  %v267_v53 = vsel %vm137_vm2, %v263_v50, 0.0  ;;  %v273_v54 = vmul.f32 %v263_v50, %v263_v50 }
 0x249   :  { %268 = vadd.xlane.f32.xlu1 %v267_v53  ;;  %v493_v53 = vld [vmem:[%s764_s4 + $0x3] ss:$0 sm:$0xff]  ;;  %s605_s4 = scalar_lea.vmem %s475_s18, 16 }
 0x24a   :  { %v264_v55 = vsel %vm137_vm2, %v262_v52, 0.0  ;;  %v272_v56 = vmul.f32 %v262_v52, %v262_v52  ;;  %v277_v57 = vsel %vm137_vm2, %v273_v54, 0.0  ;;  %p606_p5 = scmp.ne.s32.totalorder %s475_s18, %s605_s4  ;;  %p611_p7 = scmp.lt.s32.totalorder %s609_s19, %s605_s4 }
 0x24b   :  { %265 = vadd.xlane.f32.xlu0 %v264_v55 }
 0x24c   :  { %v274_v58 = vsel %vm137_vm2, %v272_v56, 0.0  ;;  %p612_p8 = por %p611_p7, %p610_p6 }
 0x24d   :  { %278 = vadd.xlane.f32.xlu1 %v277_v57 }
 0x24e   :  { %p613_p9 = pnand %p612_p8, %p606_p5 }
 0x24f   :  { %275 = vadd.xlane.f32.xlu0 %v274_v58 }
 0x2d2   :  { %v269_v3 = vpop.xlane.xlu1 %268 }
 0x2d3   :  { %v271_v4 = vmul.f32 0.015625, %v269_v3 }
 0x2d4   :  { %v266_v5 = vpop.xlane.xlu0 %265 }
 0x2d5   :  { %v270_v6 = vmul.f32 0.015625, %v266_v5  ;;  %v283_v8 = vmul.f32 %v271_v4, %v271_v4  ;;  %v291_v20 = vsub.f32 %v263_v50, %v271_v4 }
 0x2d6   :  { %v279_v7 = vpop.xlane.xlu1 %278 }
 0x2d7   :  { %v281_v9 = vmul.f32 0.015625, %v279_v7  ;;  %v282_v11 = vmul.f32 %v270_v6, %v270_v6  ;;  %v290_v18 = vsub.f32 %v262_v52, %v270_v6 }
 0x2d8   :  { %v276_v10 = vpop.xlane.xlu0 %275 }
 0x2d9   :  { %v285_v12 = vsub.f32 %v281_v9, %v283_v8  ;;  %v280_v13 = vmul.f32 0.015625, %v276_v10  ;;  %v453_v8 = vand.u32 127, %v437_v63 }
 0x2db   :  { %v287_v14 = vadd.f32 1e-05, %v285_v12  ;;  %v284_v15 = vsub.f32 %v280_v13, %v282_v11  ;;  %v458_v9 = vadd.s32 4294967288, %v453_v8  ;;  %v456_v11 = vsub.s32 %v453_v8, %v438_v0 }
 0x2dd   :  { %v286_v16 = vadd.f32 1e-05, %v284_v15  ;;  %577 = vrsqrt.f32 %v287_v14  ;;  %v461_v12 = vsub.s32 %v458_v9, %v438_v0 }
 0x2df   :  { %579 = vrsqrt.f32 %v286_v16 }
 0x2ea   :  { %v578_v17 = vpop.eup %577 }
 0x2eb   :  { %v293_v22 = vmul.f32 %v578_v17, %v291_v20 }
 0x2ec   :  { %v580_v19 = vpop.eup %579 }
 0x2ed   :  { %v292_v21 = vmul.f32 %v580_v19, %v290_v18 }
 0x2ef   :  { %563 = vmatprep.mubr.msk.f32.mxu0 %vm137_vm2, %v292_v21 }
 0x2f0   :  { %564 = vmatmul.mubr.msk.f32.vlgmr.msra.gmra.mxu0 %vm137_vm2, %v293_v22 }
 0x3b0   :  { %v565_v24 = vpop.f32.mrf.mxu0 }
 0x3b1   :  { %v384_v25 = vadd.f32 %v565_v24, %v490_v23 }
 0x3b2   :  { %v378_v26 = vpop.f32.mrf.mxu0 }
 0x3b3   :  { %v388_v27 = vmax.f32 %v384_v25, 0.0  ;;  %v379_v28 = vadd.f32 %v490_v23, %v378_v26 }
 0x3b5   :  { %v387_v29 = vmax.f32 %v379_v28, 0.0  ;;  %v393_v30 = vsel %vm389_vm3, %v388_v27, 0.0  ;;  %v400_v31 = vmul.f32 %v388_v27, %v388_v27 }
 0x3b6   :  { %394 = vadd.xlane.f32.xlu1 %v393_v30 }
 0x3b7   :  { %v390_v32 = vsel %vm389_vm3, %v387_v29, 0.0  ;;  %v399_v33 = vmul.f32 %v387_v29, %v387_v29  ;;  %v404_v34 = vsel %vm389_vm3, %v400_v31, 0.0 }
 0x3b8   :  { %391 = vadd.xlane.f32.xlu0 %v390_v32 }
 0x3b9   :  { %v401_v35 = vsel %vm389_vm3, %v399_v33, 0.0 }
 0x3ba   :  { %405 = vadd.xlane.f32.xlu1 %v404_v34 }
 0x3bc   :  { %402 = vadd.xlane.f32.xlu0 %v401_v35 }
 0x43f   :  { %v395_v37 = vpop.xlane.xlu1 %394 }
 0x440   :  { %v398_v38 = vmul.f32 0.03125, %v395_v37 }
 0x441   :  { %v392_v39 = vpop.xlane.xlu0 %391 }
 0x442   :  { %v397_v40 = vmul.f32 0.03125, %v392_v39  ;;  %v410_v42 = vmul.f32 %v398_v38, %v398_v38  ;;  %v418_v51 = vsub.f32 %v388_v27, %v398_v38 }
 0x443   :  { %v406_v41 = vpop.xlane.xlu1 %405 }
 0x444   :  { %v408_v43 = vmul.f32 0.03125, %v406_v41  ;;  %v409_v45 = vmul.f32 %v397_v40, %v397_v40  ;;  %v417_v54 = vsub.f32 %v387_v29, %v397_v40 }
 0x445   :  { %v403_v44 = vpop.xlane.xlu0 %402 }
 0x446   :  { %v412_v46 = vsub.f32 %v408_v43, %v410_v42  ;;  %v407_v47 = vmul.f32 0.03125, %v403_v44 }
 0x448   :  { %v414_v48 = vadd.f32 1e-05, %v412_v46  ;;  %v411_v49 = vsub.f32 %v407_v47, %v409_v45 }
 0x44a   :  { %581 = vrsqrt.f32 %v414_v48  ;;  %v413_v50 = vadd.f32 1e-05, %v411_v49 }
 0x44c   :  { %583 = vrsqrt.f32 %v413_v50 }
 0x457   :  { %v582_v52 = vpop.eup %581 }
 0x458   :  { %v420_v55 = vmul.f32 %v582_v52, %v418_v51 }
 0x459   :  { %v584_v56 = vpop.eup %583 }
 0x45a   :  { %v426_v57 = vmul.f32 %v493_v53, %v420_v55  ;;  %v419_v58 = vmul.f32 %v584_v56, %v417_v54 }
 0x45c   :  { %v430_v59 = vsel %vm389_vm3, %v426_v57, 0.0  ;;  %v425_v60 = vmul.f32 %v493_v53, %v419_v58 }
 0x45d   :  { %431 = vadd.xlane.f32.xlu1 %v430_v59 }
 0x45e   :  { %v427_v61 = vsel %vm389_vm3, %v425_v60, 0.0 }
 0x45f   :  { %428 = vadd.xlane.f32.xlu0 %v427_v61 }
 0x475   :  { %435 = vperm.xlu0 %571, %v39_v62  }
 0x4e6   :  { %v432_v6 = vpop.xlane.xlu1 %431 }
 0x4e8   :  { %v429_v1 = vpop.xlane.xlu0 %428 }
 0x4f0   :  { %v436_v3 = vpop.permute.xlu0 %435 }
 0x4f1   :  { %v440_v4 = vrot.slane %v436_v3, %v439_v2 }
 0x4f3   :  { %v442_v5 = vadd.f32 %v440_v4, %v429_v1  ;;  %v443_v7 = vadd.f32 %v440_v4, %v432_v6 }
 0x4f5   :  { %447 = vperm.xlu1 %572, %v442_v5  }
 0x4f9   :  { %450 = vperm.xlu1 %572, %v443_v7  }
 0x570   :  { %v448_v10 = vpop.permute.xlu1 %447 }
 0x571   :  { %v457_v14 = vrot.slane %v448_v10, %v456_v11 }
 0x574   :  { %v451_v13 = vpop.permute.xlu1 %450 }
 0x575   :  { %v462_v15 = vrot.slane %v451_v13, %v461_v12 }
 0x577   :  { %v464_v16 = vsel %vm463_vm4, %v462_v15, %v457_v14 }
 0x578   :  { %467 = vst.msk [vmem:[#allocation5] sm:$0x1] %vm466_vm5, %v464_v16 }
 0x579   :  { %616 = shalt.err (!%p613_p9)
}
 0x57a   :  { %477 = dma.vmem_to_hbm [thread:$0]  %s475_s18, 16, %s765_s5, [#allocation4]  }
 0x57b   :  { %627 = dma.done.wait [#allocation4], 16  }
 0x57c   :  { %628 = vsyncadd [#allocation4], 4294967280 }
 0x57d   :  { %481 = vsyncpa [#allocation3], 1 }
 0x57e   :  { %482 = vsyncpa [#allocation4], 1 }

</bundles_post_ra>
